<compile_context>
chip_gen: v7x
topology: tpu7x:2x2x1
jax: 0.10.0
libtpu: 0.0.40
codegen_flags: <defaults>
</compile_context>

<pallas_src>
import functools

import jax
import jax.numpy as jnp
from jax.experimental import pallas as pl
from jax.experimental.pallas import tpu as pltpu


def _round_up(v, m):
    return ((v + m - 1) // m) * m


# ---------------------------------------------------------------------------
# Kernel
# ---------------------------------------------------------------------------
def _actor_critic_kernel(x_ref, p_ref, out_ref, *, ni_pad, h2_pad, out_pad, r_b1):
    x = x_ref[...]                                            # (TB, NI_PAD)

    # Fused first layer: [critic_hidden | actor_hidden | 0-pad] = relu(x@W1 + b1)
    w1 = p_ref[0:ni_pad, 0:h2_pad]                            # (NI_PAD, H2_PAD), 8x128-aligned
    b1 = p_ref[r_b1:r_b1 + 1, 0:h2_pad]                       # (1, H2_PAD)
    h = jnp.maximum(jnp.dot(x, w1, preferred_element_type=jnp.float32) + b1, 0.0)

    # Fused heads: block-diagonal (H2_PAD, OUT_PAD) -> cols [value | mu | 0...]
    w2 = p_ref[ni_pad:ni_pad + h2_pad, 0:out_pad]             # (H2_PAD, OUT_PAD)
    b2 = p_ref[r_b1 + 1:r_b1 + 2, 0:out_pad]                  # (1, OUT_PAD)
    std_row = p_ref[r_b1 + 2:r_b1 + 3, 0:out_pad]             # exp(log_std)*mask, precomputed

    y = jnp.dot(h, w2, preferred_element_type=jnp.float32) + b2 + std_row
    out_ref[...] = y.astype(out_ref.dtype)                    # [value | mu | std | zeros]


# ---------------------------------------------------------------------------
# Parameter init / packing (packing runs once, outside the hot path)
# ---------------------------------------------------------------------------
def init_params(key, num_inputs, num_outputs, hidden_size, std=0.0):
    """Mirror init_weights: Linear weights ~ N(0, 0.1), biases = 0.1,
    log_std = std (default 0.0). Weights stored as (in, out)."""
    k1, k2, k3, k4 = jax.random.split(key, 4)
    n = lambda k, shp: 0.1 * jax.random.normal(k, shp, dtype=jnp.float32)
    return {
        # critic
        "w1c": n(k1, (num_inputs, hidden_size)),
        "b1c": jnp.full((1, hidden_size), 0.1, dtype=jnp.float32),
        "w2c": n(k2, (hidden_size, 1)),
        "b2c": jnp.full((1, 1), 0.1, dtype=jnp.float32),
        # actor
        "w1a": n(k3, (num_inputs, hidden_size)),
        "b1a": jnp.full((1, hidden_size), 0.1, dtype=jnp.float32),
        "w2a": n(k4, (hidden_size, num_outputs)),
        "b2a": jnp.full((1, num_outputs), 0.1, dtype=jnp.float32),
        # Normal-dist scale parameter
        "log_std": jnp.full((1, num_outputs), std, dtype=jnp.float32),
    }


def pack_params(params, num_inputs, num_outputs, hidden_size):
    """Pack all 9 parameter tensors into ONE pre-padded, 8x128-aligned f32 slab.

    Row layout:
      [0 : ni_pad)            fused W1 = [critic | actor]      (zero-padded)
      [ni_pad : ni_pad+h2_pad) block-diagonal W2 -> [value|mu]  (zero-padded)
      r_b1   = ni_pad+h2_pad   fused b1
      r_b1+1                   fused b2
      r_b1+2                   precomputed std row = exp(log_std) in mu+NO lanes
    """
    no = num_outputs
    h = hidden_size
    h2 = 2 * h
    ni_pad = _round_up(num_inputs, 8)          # sublane-aligned K for first matmul
    h2_pad = _round_up(h2, 128)                # lane-aligned fused hidden width
    out_pad = _round_up(1 + 2 * no, 128)       # lane-dense output width
    w_width = max(h2_pad, out_pad)
    r_b1 = ni_pad + h2_pad
    n_rows = _round_up(r_b1 + 3, 8)

    slab = jnp.zeros((n_rows, w_width), jnp.float32)

    # Fused first-layer weight: [critic | actor] along the output axis.
    w1f = jnp.concatenate([params["w1c"], params["w1a"]], axis=1)   # (NI, 2H)
    slab = slab.at[:num_inputs, :h2].set(w1f)

    # Block-diagonal second layer: col 0 = value, cols 1..NO = mu.
    slab = slab.at[ni_pad:ni_pad + h, 0:1].set(params["w2c"])
    slab = slab.at[ni_pad + h:ni_pad + h2, 1:1 + no].set(params["w2a"])

    # Fused biases.
    slab = slab.at[r_b1, 0:h].set(params["b1c"][0])
    slab = slab.at[r_b1, h:h2].set(params["b1a"][0])
    slab = slab.at[r_b1 + 1, 0].set(params["b2c"][0, 0])
    slab = slab.at[r_b1 + 1, 1:1 + no].set(params["b2a"][0])

    # std row resolved on the host: exp(log_std) confined to its lane range,
    # padded lanes stay exactly 0 (no in-kernel exp / mask multiply needed).
    slab = slab.at[r_b1 + 2, 1 + no:1 + 2 * no].set(jnp.exp(params["log_std"][0]))

    return {
        "slab": slab,
        "dims": (num_inputs, no, hidden_size, ni_pad, h2_pad, out_pad, r_b1),
    }


# ---------------------------------------------------------------------------
# Forward wrapper
# ---------------------------------------------------------------------------
def actor_critic_forward(x, packed, *, batch_tile=512, out_dtype=jnp.float32):
    """Run the fused ActorCritic forward pass. Returns (mu, std, value)."""
    ni, no, _, ni_pad, h2_pad, out_pad, r_b1 = packed["dims"]
    slab = packed["slab"]
    B = x.shape[0]

    # Batch tiling: tiny batches run as one step; large batches use big tiles
    # (multiple of 8) but keep >= 2 grid steps so v7x's 2 TCs both get work.
    if B <= batch_tile:
        tb = B
    else:
        tb = min(batch_tile, _round_up(pl.cdiv(B, 2), 8))
    b_pad = _round_up(B, tb)

    # Pad x to (b_pad, ni_pad): sublane-aligned K and no OOB rows on the last
    # grid step (padded rows produce finite junk that is sliced off below).
    x_p = x
    if b_pad != B or x.shape[1] != ni_pad:
        x_p = jnp.zeros((b_pad, ni_pad), x.dtype).at[:B, :ni].set(x)

    grid = (b_pad // tb,)
    kernel = functools.partial(
        _actor_critic_kernel, ni_pad=ni_pad, h2_pad=h2_pad, out_pad=out_pad, r_b1=r_b1)

    flops = 2 * b_pad * (ni_pad * h2_pad + h2_pad * out_pad)
    bytes_accessed = (4 * (x_p.size + slab.size)
                      + b_pad * out_pad * jnp.dtype(out_dtype).itemsize)

    out = pl.pallas_call(
        kernel,
        out_shape=jax.ShapeDtypeStruct((b_pad, out_pad), out_dtype),
        grid=grid,
        in_specs=[
            pl.BlockSpec((tb, ni_pad), lambda i: (i, 0)),   # activations: tiled over batch
            pl.BlockSpec(slab.shape, lambda i: (0, 0)),     # params: resident across grid
        ],
        out_specs=pl.BlockSpec((tb, out_pad), lambda i: (i, 0)),
        compiler_params=pltpu.CompilerParams(
            dimension_semantics=("parallel",)),             # shard batch across TCs (v7x)
        cost_estimate=pl.CostEstimate(
            flops=flops, transcendentals=0, bytes_accessed=bytes_accessed),
    )(x_p, slab)

    value = out[:B, 0:1]
    mu = out[:B, 1:1 + no]
    std = out[:B, 1 + no:1 + 2 * no]
    return mu, std, value


# ---------------------------------------------------------------------------
# Pure-JAX reference (mirrors the PyTorch module)
# ---------------------------------------------------------------------------
def reference_forward(x, p):
    hc = jnp.maximum(x @ p["w1c"] + p["b1c"], 0.0)
    value = hc @ p["w2c"] + p["b2c"]
    ha = jnp.maximum(x @ p["w1a"] + p["b1a"], 0.0)
    mu = ha @ p["w2a"] + p["b2a"]
    std = jnp.broadcast_to(jnp.exp(p["log_std"]), mu.shape)
    return mu, std, value


if __name__ == "__main__":
    # MountainCarContinuous with 16 parallel envs: obs dim = 2, action dim = 1.
    # Keep hidden small for the synthetic test.
    batch, num_inputs, num_outputs, hidden = 16, 2, 1, 32

    key = jax.random.PRNGKey(0)
    k_params, k_x, k_x2 = jax.random.split(key, 3)
    params = init_params(k_params, num_inputs, num_outputs, hidden, std=0.0)
    packed = pack_params(params, num_inputs, num_outputs, hidden)

    # --- small single-tile case (16 envs) ---
    x = jax.random.normal(k_x, (batch, num_inputs), dtype=jnp.float32)
    mu, std, value = actor_critic_forward(x, packed)
    jax.block_until_ready((mu, std, value))

    mu_r, std_r, value_r = reference_forward(x, params)
    assert mu.shape == (batch, num_outputs)
    assert std.shape == (batch, num_outputs)
    assert value.shape == (batch, 1)
    assert jnp.allclose(mu, mu_r, atol=1e-5, rtol=1e-5)
    assert jnp.allclose(std, std_r, atol=1e-5, rtol=1e-5)
    assert jnp.allclose(value, value_r, atol=1e-5, rtol=1e-5)

    # --- larger rollout-style batch: exercises multi-step grid + batch padding ---
    big_b = 1000  # deliberately not a multiple of the tile
    x2 = jax.random.normal(k_x2, (big_b, num_inputs), dtype=jnp.float32)
    mu2, std2, value2 = actor_critic_forward(x2, packed, batch_tile=512)
    jax.block_until_ready((mu2, std2, value2))
    mu2_r, std2_r, value2_r = reference_forward(x2, params)
    assert mu2.shape == (big_b, num_outputs)
    assert jnp.allclose(mu2, mu2_r, atol=1e-4, rtol=1e-4)
    assert jnp.allclose(std2, std2_r, atol=1e-4, rtol=1e-4)
    assert jnp.allclose(value2, value2_r, atol=1e-4, rtol=1e-4)

    print("KERNEL_OK")
</pallas_src>

<mosaic_0001>
module attributes {stable_mosaic.version = 11 : i64} {
  func.func @_actor_critic_kernel(%arg0: i32, %arg1: memref<16x8xf32, #tpu.memory_space<vmem>>, %arg2: memref<144x128xf32, #tpu.memory_space<vmem>>, %arg3: memref<16x128xf32, #tpu.memory_space<vmem>>) attributes {dimension_semantics = [#tpu.dimension_semantics<parallel>], iteration_bounds = array<i64: 1>, scalar_prefetch = 0 : i64, scratch_operands = 0 : i64, tpu.core_type = #tpu.core_type<tc>, window_params = [{transform_indices = @transform_0, window_bounds = array<i64: 16, 8>}, {pipeline_mode = #tpu.pipeline_mode<synchronous>, transform_indices = @transform_1, window_bounds = array<i64: 144, 128>}, {transform_indices = @transform_2, window_bounds = array<i64: 16, 128>}]} {
    %c0 = arith.constant 0 : index
    %c0_0 = arith.constant 0 : index
    %0 = vector.load %arg1[%c0, %c0_0] : memref<16x8xf32, #tpu.memory_space<vmem>>, vector<16x8xf32>
    %c0_1 = arith.constant 0 : index
    %c0_2 = arith.constant 0 : index
    %1 = vector.load %arg2[%c0_1, %c0_2] : memref<144x128xf32, #tpu.memory_space<vmem>>, vector<8x128xf32>
    %c136 = arith.constant 136 : index
    %c0_3 = arith.constant 0 : index
    %2 = vector.load %arg2[%c136, %c0_3] : memref<144x128xf32, #tpu.memory_space<vmem>>, vector<1x128xf32>
    %cst = arith.constant dense<0.000000e+00> : vector<16x128xf32>
    %3 = tpu.matmul %0, %1, %cst {dimension_numbers = #tpu.dot_dimension_numbers<[1], [0], [0], [1], [0, 0, 1, 1], [], []>} : vector<16x8xf32>, vector<8x128xf32>, vector<16x128xf32> -> vector<16x128xf32>
    %4 = vector.broadcast %2 : vector<1x128xf32> to vector<16x128xf32>
    %5 = arith.addf %3, %4 : vector<16x128xf32>
    %cst_4 = arith.constant 0.000000e+00 : f32
    %6 = vector.broadcast %cst_4 : f32 to vector<16x128xf32>
    %7 = arith.maximumf %5, %6 : vector<16x128xf32>
    %c8 = arith.constant 8 : index
    %c0_5 = arith.constant 0 : index
    %8 = vector.load %arg2[%c8, %c0_5] : memref<144x128xf32, #tpu.memory_space<vmem>>, vector<128x128xf32>
    %c137 = arith.constant 137 : index
    %c0_6 = arith.constant 0 : index
    %9 = vector.load %arg2[%c137, %c0_6] : memref<144x128xf32, #tpu.memory_space<vmem>>, vector<1x128xf32>
    %c138 = arith.constant 138 : index
    %c0_7 = arith.constant 0 : index
    %10 = vector.load %arg2[%c138, %c0_7] : memref<144x128xf32, #tpu.memory_space<vmem>>, vector<1x128xf32>
    %cst_8 = arith.constant dense<0.000000e+00> : vector<16x128xf32>
    %11 = tpu.matmul %7, %8, %cst_8 {dimension_numbers = #tpu.dot_dimension_numbers<[1], [0], [0], [1], [0, 0, 1, 1], [], []>} : vector<16x128xf32>, vector<128x128xf32>, vector<16x128xf32> -> vector<16x128xf32>
    %12 = vector.broadcast %9 : vector<1x128xf32> to vector<16x128xf32>
    %13 = arith.addf %11, %12 : vector<16x128xf32>
    %14 = vector.broadcast %10 : vector<1x128xf32> to vector<16x128xf32>
    %15 = arith.addf %13, %14 : vector<16x128xf32>
    %c0_9 = arith.constant 0 : index
    %c0_10 = arith.constant 0 : index
    %16 = vector.load %arg3[%c0_9, %c0_10] : memref<16x128xf32, #tpu.memory_space<vmem>>, vector<16x128xf32>
    tpu.vector_store %arg3[%c0_9, %c0_10], %15 {strides = array<i32>} : memref<16x128xf32, #tpu.memory_space<vmem>>, vector<16x128xf32>,
    return
  }
  func.func @transform_0(%arg0: i32) -> (i32, i32) {
    %c0_i32 = arith.constant 0 : i32
    %c0_i32_0 = arith.constant 0 : i32
    return %arg0, %c0_i32 : i32, i32
  }
  func.func @transform_1(%arg0: i32) -> (i32, i32) {
    %c0_i32 = arith.constant 0 : i32
    %c0_i32_0 = arith.constant 0 : i32
    %c0_i32_1 = arith.constant 0 : i32
    return %c0_i32, %c0_i32_0 : i32, i32
  }
  func.func @transform_2(%arg0: i32) -> (i32, i32) {
    %c0_i32 = arith.constant 0 : i32
    %c0_i32_0 = arith.constant 0 : i32
    return %arg0, %c0_i32 : i32, i32
  }
}

</mosaic_0001>

<bundles_post_ra>
// kernel: tpu_custom_call.1
= control target key start
LH: loop header
LB: loop body
LE: loop exit
PB: predicated region body
PF: predicated region fallthrough
CT: control target
= control target key end

     0   :  { %7 = vsyncpa [#allocation3], 0  ;;  %s445_s0 = inlined_call_operand.vmem [shape: f32[16,8], index: 0, kind: input, shape index: {}]   ;;  %s446_s1 = inlined_call_operand.hbm [shape: f32[144,128], index: 1, kind: input, shape index: {}]   ;;  %s447_s2 = inlined_call_operand.hbm [shape: f32[16,128], index: 2, kind: output, shape index: {}]  }
   0x1   :  { %8 = vsyncpa [#allocation4], 0  ;;  %s390_s9 = smov [#allocation2]   ;;  %s342_s13 = scalar_lea.hbm %s446_s1, 2304 }
   0x2   :  { %s16_s10 = sshll.u32 %s390_s9, 4  ;;  %p343_p0 = scmp.ne.s32.totalorder %s446_s1, %s342_s13  ;;  %s17_s10 = int_to_ptr.vmem [resolvable:$true] %s16_s10 }
   0x3   :  { %p346_p1 = scmp.lt.u32.totalorder %s342_s13, %s446_s1 }
   0x5   :  { %p348_p2 = pnand %p346_p1, %p343_p0 }
   0x7   :  { %351 = shalt.err (!%p348_p2)
}
   0x8   :  { %s352_s18 = scalar_lea.vmem %s17_s10, 2304  ;;  %p357_p4 = scmp.lt.s32.totalorder %s17_s10, %s17_s10 }
   0x9   :  { %p353_p3 = scmp.ne.s32.totalorder %s17_s10, %s352_s18  ;;  %p358_p5 = scmp.lt.s32.totalorder %s352_s18, %s352_s18 }
   0xb   :  { %p359_p6 = por %p358_p5, %p357_p4 }
   0xd   :  { %p360_p7 = pnand %p359_p6, %p353_p3 }
   0xf   :  { %363 = shalt.err (!%p360_p7)
}
  0x10   :  { %s391_s19 = smov 128   ;;  %s392_s20 = smov 8  }
  0x11   :  { %22 = dma.hbm_to_vmem [thread:$0]  %s446_s1, 2304, %s17_s10, [#allocation3], %s391_s19, %s391_s19, %s392_s20  }
  0x12   :  { %386 = dma.done.wait [#allocation3], 2304  }
  0x13   :  { %387 = vsyncadd [#allocation3], 4294964992  ;;  %vm34_vm0 = vcmask 64512   ;;  %v28_v0 = vld [vmem:[#allocation2] sm:$0xff]  ;;  %v27_v2 = vld [vmem:[%s445_s0 + $0x8] sm:$0xff] }
  0x14   :  { %v26_v1 = vld [vmem:[%s445_s0] sm:$0xff]  ;;  %266 = vmatprep.subr.mxu0 %v28_v0  ;;  %v118_v3 = vld [vmem:[#allocation2 + $0x8] sm:$0xff]  ;;  %v119_v4 = vld [vmem:[#allocation2 + $0x10] sm:$0xff]  ;;  %s393_s0 = smov [#allocation5]  }
  0x15   :  { %268 = vmatprep.mubr.msk.f32.mxu0 %vm34_vm0, %v26_v1  ;;  %v120_v5 = vld [vmem:[#allocation2 + $0x18] sm:$0xff]  ;;  %267 = vmatpush3.msra.mxu0 %v28_v0  ;;  %v306_v6 = vpack.c.bf16 %v119_v4, %v118_v3  ;;  %v121_v7 = vld [vmem:[#allocation2 + $0x20] sm:$0xff]  ;;  %v122_v9 = vld [vmem:[#allocation2 + $0x28] sm:$0xff]  ;;  %s228_s1 = sshll.u32 %s393_s0, 4  ;;  %s229_s1 = int_to_ptr.vmem [resolvable:$true] %s228_s1 }
  0x16   :  { %269 = vmatmul.mubr.msk.f32.vlgmr.msra.gmra.mrb[0].mxu0 %vm34_vm0, %v27_v2  ;;  %v310_v8 = vpack.c.bf16 %v121_v7, %v120_v5  ;;  %v123_v10 = vld [vmem:[#allocation2 + $0x30] sm:$0xff]  ;;  %v124_v12 = vld [vmem:[#allocation2 + $0x38] sm:$0xff]  ;;  %v125_v13 = vld [vmem:[#allocation2 + $0x40] sm:$0xff]  ;;  %s364_s27 = scalar_lea.vmem %s229_s1, 256  ;;  %p369_p9 = scmp.lt.s32.totalorder %s229_s1, %s229_s1 }
  0x17   :  { %307 = vmatprep.subr.bf16.mxu1 %v306_v6  ;;  %v314_v11 = vpack.c.bf16 %v123_v10, %v122_v9  ;;  %v318_v14 = vpack.c.bf16 %v125_v13, %v124_v12  ;;  %v126_v15 = vld [vmem:[#allocation2 + $0x48] sm:$0xff]  ;;  %v127_v16 = vld [vmem:[#allocation2 + $0x50] sm:$0xff]  ;;  %v128_v18 = vld [vmem:[#allocation2 + $0x58] sm:$0xff]  ;;  %p365_p8 = scmp.ne.s32.totalorder %s229_s1, %s364_s27  ;;  %p370_p10 = scmp.lt.s32.totalorder %s364_s27, %s364_s27 }
  0x18   :  { %309 = vmatpush3.bf16.msra.mxu1 %v306_v6  ;;  %v322_v17 = vpack.c.bf16 %v127_v16, %v126_v15  ;;  %v129_v19 = vld [vmem:[#allocation2 + $0x60] sm:$0xff]  ;;  %v130_v21 = vld [vmem:[#allocation2 + $0x68] sm:$0xff]  ;;  %v131_v22 = vld [vmem:[#allocation2 + $0x70] sm:$0xff] }
  0x19   :  { %311 = vmatprep.subr.bf16.mxu1 %v310_v8  ;;  %v326_v20 = vpack.c.bf16 %v129_v19, %v128_v18  ;;  %v330_v23 = vpack.c.bf16 %v131_v22, %v130_v21  ;;  %v132_v24 = vld [vmem:[#allocation2 + $0x78] sm:$0xff]  ;;  %v133_v25 = vld [vmem:[#allocation2 + $0x80] sm:$0xff]  ;;  %v240_v27 = vld [vmem:[#allocation2 + $0x88] ss:$0 sm:$0xff]  ;;  %p371_p11 = por %p370_p10, %p369_p9 }
  0x1a   :  { %v334_v26 = vpack.c.bf16 %v133_v25, %v132_v24  ;;  %v243_v34 = vld [vmem:[#allocation2 + $0x89] ss:$0 sm:$0xff]  ;;  %v244_v35 = vld [vmem:[#allocation2 + $0x8a] ss:$0 sm:$0xff] }
  0x1b   :  { %p372_p12 = pnand %p371_p11, %p365_p8 }
  0x1c   :  { %313 = vmatpush3.bf16.msra.mxu1 %v310_v8 }
  0x1d   :  { %315 = vmatprep.subr.bf16.mxu1 %v314_v11 }
  0x20   :  { %317 = vmatpush3.bf16.msra.mxu1 %v314_v11 }
  0x21   :  { %319 = vmatprep.subr.bf16.mxu1 %v318_v14 }
  0x24   :  { %321 = vmatpush3.bf16.msra.mxu1 %v318_v14 }
  0x25   :  { %323 = vmatprep.subr.bf16.mxu1 %v322_v17 }
  0x28   :  { %325 = vmatpush3.bf16.msra.mxu1 %v322_v17 }
  0x29   :  { %327 = vmatprep.subr.bf16.mxu1 %v326_v20 }
  0x2c   :  { %329 = vmatpush3.bf16.msra.mxu1 %v326_v20 }
  0x2d   :  { %331 = vmatprep.subr.bf16.mxu1 %v330_v23 }
  0x30   :  { %333 = vmatpush3.bf16.msra.mxu1 %v330_v23 }
  0x31   :  { %335 = vmatprep.subr.bf16.mxu1 %v334_v26 }
  0x34   :  { %337 = vmatpush3.bf16.msra.mxu1 %v334_v26 }
  0xe9   :  { %v270_v28 = vpop.f32.mrb[0].mxu0 }
  0xea   :  { %v113_v29 = vadd.f32 %v270_v28, %v240_v27  ;;  %v107_v30 = vpop.f32.mrb[1].mxu0 }
  0xeb   :  { %v108_v31 = vadd.f32 %v240_v27, %v107_v30 }
  0xec   :  { %v117_v33 = vmax.f32 %v113_v29, 0.0 }
  0xed   :  { %v116_v32 = vmax.f32 %v108_v31, 0.0 }
  0xef   :  { %303 = vmatprep.mubr.f32.mxu1 %v116_v32 }
  0xf0   :  { %304 = vmatmul.mubr.f32.vlgmr.msra.gmra.mrb[0].mxu1 %v117_v33 }
 0x1c3   :  { %v305_v36 = vpop.f32.mrb[0].mxu1 }
 0x1c4   :  { %v212_v37 = vadd.f32 %v305_v36, %v243_v34  ;;  %v206_v38 = vpop.f32.mrb[1].mxu1 }
 0x1c5   :  { %v207_v39 = vadd.f32 %v243_v34, %v206_v38 }
 0x1c6   :  { %v220_v40 = vadd.f32 %v244_v35, %v212_v37 }
 0x1c7   :  { %v219_v41 = vadd.f32 %v244_v35, %v207_v39 }
 0x1c8   :  { %222 = vst [vmem:[#allocation5 + $0x8] sm:$0xff] %v220_v40 }
 0x1c9   :  { %221 = vst [vmem:[#allocation5] sm:$0xff] %v219_v41 }
 0x1ca   :  { %375 = shalt.err (!%p372_p12)
}
 0x1cb   :  { %s376_s30 = scalar_lea.hbm %s447_s2, 256 }
 0x1cc   :  { %p377_p13 = scmp.ne.s32.totalorder %s447_s2, %s376_s30  ;;  %p380_p0 = scmp.lt.u32.totalorder %s376_s30, %s447_s2 }
 0x1ce   :  { %p382_p1 = pnand %p380_p0, %p377_p13 }
 0x1d0   :  { %385 = shalt.err (!%p382_p1)
}
 0x1d1   :  { %234 = dma.vmem_to_hbm [thread:$0]  %s229_s1, 256, %s447_s2, [#allocation4], %s391_s19, %s391_s19, %s392_s20  }
 0x1d2   :  { %388 = dma.done.wait [#allocation4], 256  }
 0x1d3   :  { %389 = vsyncadd [#allocation4], 4294967040 }
 0x1d4   :  { %238 = vsyncpa [#allocation3], 1 }
 0x1d5   :  { %239 = vsyncpa [#allocation4], 1 }

</bundles_post_ra>
